<compile_context>
chip_gen: v7x
topology: tpu7x:2x2x1
jax: 0.10.0
libtpu: 0.0.40
codegen_flags: <defaults>
</compile_context>

<pallas_src>
import jax
import jax.numpy as jnp
from jax import lax
from jax.experimental import pallas as pl
from jax.experimental.pallas import tpu as pltpu


def _round_up(x, m):
    return ((x + m - 1) // m) * m


# --- path selection / tiling knobs -------------------------------------------
_ONE_HOT_MAX_V = 4096            # one-hot gather path: max vocab size
_VMEM_TABLE_BUDGET = 16 << 20    # max total table bytes kept VMEM-resident
_VMEM_MAX_ROWS = 256             # rows per grid step on the VMEM path
_HBM_GATHER_BYTES = 2 << 20      # per-gather-buffer byte budget on HBM path
_HBM_MAX_ROWS = 4096


def _plan(batch, max_rows):
    """(rows per grid step, padded batch)."""
    if batch <= max_rows:
        rows = _round_up(batch, 8)       # single step, sublane aligned
    else:
        rows = max_rows                  # multiple of 128 -> lane aligned
    return rows, _round_up(batch, rows)


def _hbm_rows(D, itemsize):
    r = _HBM_GATHER_BYTES // (D * itemsize)
    return int(max(128, min(_HBM_MAX_ROWS, (r // 128) * 128)))


def _vmem_limit(bytes_needed):
    # >= scoped defaults (16/32 MiB), < v7x's 64 MiB physical VMEM.
    return int(min(max(bytes_needed, 32 << 20), 56 << 20))


def _use_vmem_path(V, total_table_bytes):
    return V <= _ONE_HOT_MAX_V and total_table_bytes <= _VMEM_TABLE_BUDGET


# -----------------------------------------------------------------------------
# VMEM-resident-table fast path: one-hot @ table MXU gather (exact)
# -----------------------------------------------------------------------------
def _gather_vmem_kernel(idx_ref, tab_ref, out_ref):
    rows = out_ref.shape[0]
    V = tab_ref.shape[0]
    iota = lax.broadcasted_iota(jnp.int32, (rows, V), 1)
    one_hot = (idx_ref[...] == iota).astype(tab_ref.dtype)        # (rows, V)
    out_ref[...] = jnp.dot(one_hot, tab_ref[...],
                           preferred_element_type=jnp.float32
                           ).astype(out_ref.dtype)


def _score_vmem_kernel(in_idx_ref, tgt_idx_ref, in_tab, out_tab, score_ref):
    rows = score_ref.shape[1]
    V = in_tab.shape[0]
    iota = lax.broadcasted_iota(jnp.int32, (rows, V), 1)
    oh_i = (in_idx_ref[...] == iota).astype(in_tab.dtype)
    oh_t = (tgt_idx_ref[...] == iota).astype(out_tab.dtype)
    g_i = jnp.dot(oh_i, in_tab[...], preferred_element_type=jnp.float32)
    g_t = jnp.dot(oh_t, out_tab[...], preferred_element_type=jnp.float32)
    s = jnp.sum(g_i * g_t, axis=-1, keepdims=True)                # (rows, 1)
    score_ref[...] = jnp.transpose(s).astype(score_ref.dtype)     # (1, rows)


# -----------------------------------------------------------------------------
# HBM fallback path: per-row DMA gather, aggregated byte-counting wait
# -----------------------------------------------------------------------------
def _gather_hbm_kernel(idx_ref, tab_hbm, out_ref, sem):
    rows = out_ref.shape[0]
    base = pl.program_id(0) * rows

    def issue(r, c):
        # DMA the table row directly into the pipelined output block.
        pltpu.make_async_copy(tab_hbm.at[idx_ref[base + r]],
                              out_ref.at[r], sem).start()
        return c

    lax.fori_loop(0, rows, issue, 0, unroll=8)

    # One aggregated wait: the DMA semaphore counts bytes, so a single wait
    # whose descriptor covers the full (rows, D) block consumes exactly what
    # the `rows` row copies signaled.
    pltpu.make_async_copy(tab_hbm.at[pl.ds(0, rows)], out_ref, sem).wait()


def _score_hbm_kernel(in_idx_ref, tgt_idx_ref, in_tab, out_tab, score_ref,
                      ibuf, obuf, sem):
    rows = ibuf.shape[0]
    base = pl.program_id(0) * rows

    def issue(r, c):
        pltpu.make_async_copy(in_tab.at[in_idx_ref[base + r]],
                              ibuf.at[r], sem.at[0]).start()
        pltpu.make_async_copy(out_tab.at[tgt_idx_ref[base + r]],
                              obuf.at[r], sem.at[1]).start()
        return c

    lax.fori_loop(0, rows, issue, 0, unroll=8)

    # One aggregated wait per semaphore (byte-counting).
    pltpu.make_async_copy(in_tab.at[pl.ds(0, rows)], ibuf, sem.at[0]).wait()
    pltpu.make_async_copy(out_tab.at[pl.ds(0, rows)], obuf, sem.at[1]).wait()

    prod = ibuf[...].astype(jnp.float32) * obuf[...].astype(jnp.float32)
    s = jnp.sum(prod, axis=-1, keepdims=True)                     # (rows, 1)
    score_ref[...] = jnp.transpose(s).astype(score_ref.dtype)     # (1, rows)


# -----------------------------------------------------------------------------
# Wrappers
# -----------------------------------------------------------------------------
def embedding_lookup(emb, idx):
    """Gather rows `idx` from embedding table `emb`: (V, D), (B,) -> (B, D)."""
    V, D = emb.shape
    idx = jnp.asarray(idx)
    B = int(idx.shape[0])
    itemsize = jnp.dtype(emb.dtype).itemsize
    idx = jnp.clip(idx.astype(jnp.int32), 0, V - 1)   # bounds-safe (clamps OOB)

    if _use_vmem_path(V, V * D * itemsize):
        rows, b_pad = _plan(B, _VMEM_MAX_ROWS)
        idx_pad = jnp.zeros((b_pad, 1), jnp.int32).at[:B, 0].set(idx)
        need = (2 * V * D * itemsize + 2 * rows * D * itemsize
                + 2 * rows * V * 4 + (4 << 20))
        out = pl.pallas_call(
            _gather_vmem_kernel,
            out_shape=jax.ShapeDtypeStruct((b_pad, D), emb.dtype),
            grid_spec=pltpu.PrefetchScalarGridSpec(
                num_scalar_prefetch=0,
                grid=(b_pad // rows,),
                in_specs=[pl.BlockSpec((rows, 1), lambda b: (b, 0)),
                          pl.BlockSpec((V, D), lambda b: (0, 0))],   # table in VMEM
                out_specs=pl.BlockSpec((rows, D), lambda b: (b, 0))),
            compiler_params=pltpu.CompilerParams(
                dimension_semantics=("parallel",),
                vmem_limit_bytes=_vmem_limit(need)),
            cost_estimate=pl.CostEstimate(
                flops=2 * b_pad * V * D, transcendentals=0,
                bytes_accessed=(V + 2 * b_pad) * D * itemsize),
        )(idx_pad, emb)
        return out[:B]

    # HBM fallback: per-row DMA gather directly into the output block.
    rows, b_pad = _plan(B, _hbm_rows(D, itemsize))
    idx_pad = jnp.zeros((b_pad,), jnp.int32).at[:B].set(idx)
    need = 4 * rows * D * itemsize + (8 << 20)
    out = pl.pallas_call(
        _gather_hbm_kernel,
        out_shape=jax.ShapeDtypeStruct((b_pad, D), emb.dtype),
        grid_spec=pltpu.PrefetchScalarGridSpec(
            num_scalar_prefetch=1,
            grid=(b_pad // rows,),
            in_specs=[pl.BlockSpec(memory_space=pl.ANY)],   # table stays in HBM
            out_specs=pl.BlockSpec((rows, D), lambda b, idx_ref: (b, 0)),
            scratch_shapes=[pltpu.SemaphoreType.DMA(())]),
        compiler_params=pltpu.CompilerParams(
            dimension_semantics=("parallel",),
            vmem_limit_bytes=_vmem_limit(need)),
        cost_estimate=pl.CostEstimate(
            flops=0, transcendentals=0,
            bytes_accessed=2 * b_pad * D * itemsize),
    )(idx_pad, emb)
    return out[:B]


def skipgram_predictions(in_vec, out_vec, input_idx, target_idx):
    """sum(in_vec[input_idx] * out_vec[target_idx], axis=1) -> (B,) float32."""
    V, D = in_vec.shape
    input_idx = jnp.asarray(input_idx)
    target_idx = jnp.asarray(target_idx)
    B = int(input_idx.shape[0])
    itemsize = jnp.dtype(in_vec.dtype).itemsize
    in_idx = jnp.clip(input_idx.astype(jnp.int32), 0, V - 1)
    tg_idx = jnp.clip(target_idx.astype(jnp.int32), 0, V - 1)
    table_bytes = (V * D * itemsize
                   + V * D * jnp.dtype(out_vec.dtype).itemsize)

    if _use_vmem_path(V, table_bytes):
        rows, b_pad = _plan(B, _VMEM_MAX_ROWS)
        in_pad = jnp.zeros((b_pad, 1), jnp.int32).at[:B, 0].set(in_idx)
        tg_pad = jnp.zeros((b_pad, 1), jnp.int32).at[:B, 0].set(tg_idx)
        need = (2 * table_bytes + 4 * rows * V * 4
                + 2 * rows * D * 4 + (4 << 20))
        scores = pl.pallas_call(
            _score_vmem_kernel,
            out_shape=jax.ShapeDtypeStruct((1, b_pad), jnp.float32),
            grid_spec=pltpu.PrefetchScalarGridSpec(
                num_scalar_prefetch=0,
                grid=(b_pad // rows,),
                in_specs=[pl.BlockSpec((rows, 1), lambda b: (b, 0)),
                          pl.BlockSpec((rows, 1), lambda b: (b, 0)),
                          pl.BlockSpec((V, D), lambda b: (0, 0)),
                          pl.BlockSpec((V, D), lambda b: (0, 0))],
                out_specs=pl.BlockSpec((1, rows), lambda b: (0, b))),
            compiler_params=pltpu.CompilerParams(
                dimension_semantics=("parallel",),
                vmem_limit_bytes=_vmem_limit(need)),
            cost_estimate=pl.CostEstimate(
                flops=2 * b_pad * D * (2 * V + 1), transcendentals=0,
                bytes_accessed=table_bytes + 3 * b_pad * 4),
        )(in_pad, tg_pad, in_vec, out_vec)
        return scores[0, :B]

    # HBM fallback: fused per-row DMA gather of both tables + mul + reduce.
    rows, b_pad = _plan(B, _hbm_rows(D, itemsize))
    in_pad = jnp.zeros((b_pad,), jnp.int32).at[:B].set(in_idx)
    tg_pad = jnp.zeros((b_pad,), jnp.int32).at[:B].set(tg_idx)
    need = 4 * rows * D * itemsize + 2 * rows * D * 4 + (8 << 20)
    scores = pl.pallas_call(
        _score_hbm_kernel,
        out_shape=jax.ShapeDtypeStruct((1, b_pad), jnp.float32),
        grid_spec=pltpu.PrefetchScalarGridSpec(
            num_scalar_prefetch=2,
            grid=(b_pad // rows,),
            in_specs=[pl.BlockSpec(memory_space=pl.ANY),     # in_vec in HBM
                      pl.BlockSpec(memory_space=pl.ANY)],    # out_vec in HBM
            out_specs=pl.BlockSpec(
                (1, rows), lambda b, i_ref, t_ref: (0, b)),
            scratch_shapes=[pltpu.VMEM((rows, D), in_vec.dtype),
                            pltpu.VMEM((rows, D), out_vec.dtype),
                            pltpu.SemaphoreType.DMA((2,))]),
        compiler_params=pltpu.CompilerParams(
            dimension_semantics=("parallel",),
            vmem_limit_bytes=_vmem_limit(need)),
        cost_estimate=pl.CostEstimate(
            flops=2 * b_pad * D, transcendentals=0,
            bytes_accessed=2 * b_pad * D * itemsize + 3 * b_pad * 4),
    )(in_pad, tg_pad, in_vec, out_vec)
    return scores[0, :B]


# -----------------------------------------------------------------------------
# Word2Vec module (JAX/Pallas) — operates on integer word indices
# -----------------------------------------------------------------------------
class Word2VecPallas:
    def __init__(self, vocab_size, vector_size=32, key=None):
        self.vocab_size = vocab_size
        self.vector_size = vector_size
        key = jax.random.PRNGKey(0) if key is None else key
        k_in, k_out = jax.random.split(key)
        # nn.Embedding default init: N(0, 1)
        self.in_vec = jax.random.normal(
            k_in, (vocab_size, vector_size), dtype=jnp.float32)
        self.out_vec = jax.random.normal(
            k_out, (vocab_size, vector_size), dtype=jnp.float32)

    def forward(self, word_idx):
        return embedding_lookup(self.in_vec, word_idx)

    def forward_out(self, word_idx):
        return embedding_lookup(self.out_vec, word_idx)

    def predictions(self, input_idx, target_idx):
        # Fused: both gathers + elementwise mul + reduce in one pallas_call.
        return skipgram_predictions(self.in_vec, self.out_vec,
                                    input_idx, target_idx)

    def transform(self):
        # Embeddings for the whole vocabulary (reference `transform`).
        return embedding_lookup(
            self.in_vec, jnp.arange(self.vocab_size, dtype=jnp.int32))


if __name__ == "__main__":
    vocab_size = 64
    vector_size = 32
    batch = 8

    key = jax.random.PRNGKey(0)
    k_model, k_in, k_tg, k_in2, k_tg2 = jax.random.split(key, 5)

    model = Word2VecPallas(vocab_size, vector_size, key=k_model)

    input_idx = jax.random.randint(k_in, (batch,), 0, vocab_size,
                                   dtype=jnp.int32)
    target_idx = jax.random.randint(k_tg, (batch,), 0, vocab_size,
                                    dtype=jnp.int32)

    i_vec = model.forward(input_idx)
    o_vec = model.forward_out(target_idx)
    preds = model.predictions(input_idx, target_idx)
    emb_all = model.transform()
    jax.block_until_ready((i_vec, o_vec, preds, emb_all))

    # pure-JAX reference checks
    i_ref = jnp.take(model.in_vec, input_idx, axis=0)
    o_ref = jnp.take(model.out_vec, target_idx, axis=0)
    p_ref = jnp.sum(i_ref * o_ref, axis=1)

    assert i_vec.shape == (batch, vector_size)
    assert o_vec.shape == (batch, vector_size)
    assert preds.shape == (batch,)
    assert jnp.allclose(i_vec, i_ref, atol=1e-6)
    assert jnp.allclose(o_vec, o_ref, atol=1e-6)
    assert jnp.allclose(preds, p_ref, atol=1e-5)
    assert jnp.allclose(emb_all, model.in_vec, atol=1e-6)

    # multi-block / padded-batch case (grid > 1, lane-dense score tiles)
    big_batch = 300
    in2 = jax.random.randint(k_in2, (big_batch,), 0, vocab_size, dtype=jnp.int32)
    tg2 = jax.random.randint(k_tg2, (big_batch,), 0, vocab_size, dtype=jnp.int32)
    p2 = model.predictions(in2, tg2)
    jax.block_until_ready(p2)
    p2_ref = jnp.sum(jnp.take(model.in_vec, in2, axis=0)
                     * jnp.take(model.out_vec, tg2, axis=0), axis=1)
    assert p2.shape == (big_batch,)
    assert jnp.allclose(p2, p2_ref, atol=1e-5)

    print("KERNEL_OK")
</pallas_src>

<mosaic_0001>
module attributes {stable_mosaic.version = 11 : i64} {
  func.func @_gather_vmem_kernel(%arg0: i32, %arg1: memref<8x1xi32, #tpu.memory_space<vmem>>, %arg2: memref<64x32xf32, #tpu.memory_space<vmem>>, %arg3: memref<8x32xf32, #tpu.memory_space<vmem>>) attributes {dimension_semantics = [#tpu.dimension_semantics<parallel>], iteration_bounds = array<i64: 1>, scalar_prefetch = 0 : i64, scratch_operands = 0 : i64, tpu.core_type = #tpu.core_type<tc>, window_params = [{transform_indices = @transform_0, window_bounds = array<i64: 8, 1>}, {pipeline_mode = #tpu.pipeline_mode<synchronous>, transform_indices = @transform_1, window_bounds = array<i64: 64, 32>}, {transform_indices = @transform_2, window_bounds = array<i64: 8, 32>}]} {
    %0 = tpu.iota {dimensions = array<i32: 1>} : vector<8x64xi32>
    %c0 = arith.constant 0 : index
    %c0_0 = arith.constant 0 : index
    %1 = vector.load %arg1[%c0, %c0_0] : memref<8x1xi32, #tpu.memory_space<vmem>>, vector<8x1xi32>
    %2 = vector.broadcast %1 : vector<8x1xi32> to vector<8x64xi32>
    %3 = arith.cmpi eq, %2, %0 : vector<8x64xi32>
    %4 = arith.extui %3 : vector<8x64xi1> to vector<8x64xi32>
    %5 = arith.sitofp %4 : vector<8x64xi32> to vector<8x64xf32>
    %c0_1 = arith.constant 0 : index
    %c0_2 = arith.constant 0 : index
    %6 = vector.load %arg2[%c0_1, %c0_2] : memref<64x32xf32, #tpu.memory_space<vmem>>, vector<64x32xf32>
    %cst = arith.constant dense<0.000000e+00> : vector<8x32xf32>
    %7 = tpu.matmul %5, %6, %cst {dimension_numbers = #tpu.dot_dimension_numbers<[1], [0], [0], [1], [0, 0, 1, 1], [], []>} : vector<8x64xf32>, vector<64x32xf32>, vector<8x32xf32> -> vector<8x32xf32>
    %c0_3 = arith.constant 0 : index
    %c0_4 = arith.constant 0 : index
    %8 = vector.load %arg3[%c0_3, %c0_4] : memref<8x32xf32, #tpu.memory_space<vmem>>, vector<8x32xf32>
    tpu.vector_store %arg3[%c0_3, %c0_4], %7 {strides = array<i32>} : memref<8x32xf32, #tpu.memory_space<vmem>>, vector<8x32xf32>,
    return
  }
  func.func @transform_0(%arg0: i32) -> (i32, i32) {
    %c0_i32 = arith.constant 0 : i32
    %c0_i32_0 = arith.constant 0 : i32
    return %arg0, %c0_i32 : i32, i32
  }
  func.func @transform_1(%arg0: i32) -> (i32, i32) {
    %c0_i32 = arith.constant 0 : i32
    %c0_i32_0 = arith.constant 0 : i32
    %c0_i32_1 = arith.constant 0 : i32
    return %c0_i32, %c0_i32_0 : i32, i32
  }
  func.func @transform_2(%arg0: i32) -> (i32, i32) {
    %c0_i32 = arith.constant 0 : i32
    %c0_i32_0 = arith.constant 0 : i32
    return %arg0, %c0_i32 : i32, i32
  }
}

</mosaic_0001>

<bundles_post_ra>
// kernel: tpu_custom_call.1
= control target key start
LH: loop header
LB: loop body
LE: loop exit
PB: predicated region body
PF: predicated region fallthrough
CT: control target
= control target key end

     0   :  { %v191_v3 = vmov 0   ;;  %v192_v4 = vmov 0.0|0.0   ;;  %vm193_vm0 = vmmov 0   ;;  %v194_v9 = vmov 0.0   ;;  %s250_s0 = inlined_call_operand.vmem [shape: s32[8,1], index: 0, kind: input, shape index: {}]   ;;  %s251_s1 = inlined_call_operand.vmem [shape: f32[64,32], index: 1, kind: input, shape index: {}]   ;;  %s252_s2 = inlined_call_operand.hbm [shape: f32[8,32], index: 2, kind: output, shape index: {}]  }
   0x1   :  { %v14_v0 = vld [vmem:[%s250_s0] sm:$0xff]  ;;  %v22_v2 = vld [vmem:[%s251_s1 + $0x8] sm:$0xff]  ;;  %166 = vset.pattern.permute.xlu0 %v191_v3  ;;  %149 = vmatprep.subr.bf16.mxu0 %v192_v4  ;;  %v23_v6 = vld [vmem:[%s251_s1 + $0x10] sm:$0xff] }
   0x2   :  { %v21_v1 = vld [vmem:[%s251_s1] sm:$0xff]  ;;  %v24_v7 = vld [vmem:[%s251_s1 + $0x18] sm:$0xff]  ;;  %16 = vperm.xlu0 %166, %v14_v0   ;;  %146 = vmatprep.mubr.msk.f32.mxu0 %vm193_vm0, %v194_v9 }
   0x3   :  { %v150_v5 = vpack.c.bf16 %v22_v2, %v21_v1  ;;  %v153_v8 = vpack.c.bf16 %v24_v7, %v23_v6 }
   0x5   :  { %151 = vmatpush3.bf16.msra.mxu0 %v150_v5 }
   0x6   :  { %7 = vsyncpa [#allocation3], 0  ;;  %152 = vmatprep.subr.bf16.mxu0 %v192_v4  ;;  %v25_v10 = vld [vmem:[%s251_s1 + $0x20] sm:$0xff]  ;;  %v26_v11 = vld [vmem:[%s251_s1 + $0x28] sm:$0xff]  ;;  %v12_v16 = vlaneseq  ;;  %vm29_vm1 = vcmask 523264   ;;  %s195_s26 = smov [#allocation2]  }
   0x7   :  { %v156_v12 = vpack.c.bf16 %v26_v11, %v25_v10  ;;  %v27_v13 = vld [vmem:[%s251_s1 + $0x30] sm:$0xff]  ;;  %v28_v14 = vld [vmem:[%s251_s1 + $0x38] sm:$0xff]  ;;  %s111_s27 = sshll.u32 %s195_s26, 4  ;;  %vm103_vm3 = vcmask 261120   ;;  %s112_s27 = int_to_ptr.vmem [resolvable:$true] %s111_s27 }
   0x8   :  { %v159_v15 = vpack.c.bf16 %v28_v14, %v27_v13  ;;  %v13_v17 = vand.u32 127, %v12_v16  ;;  %s167_s28 = scalar_lea.vmem %s112_s27, 128  ;;  %p172_p1 = scmp.lt.s32.totalorder %s112_s27, %s112_s27 }
   0x9   :  { %154 = vmatpush3.bf16.msra.mxu0 %v153_v8  ;;  %p168_p0 = scmp.ne.s32.totalorder %s112_s27, %s167_s28  ;;  %p173_p2 = scmp.lt.s32.totalorder %s167_s28, %s167_s28 }
   0xa   :  { %155 = vmatprep.subr.bf16.mxu0 %v192_v4 }
   0xb   :  { %p174_p3 = por %p173_p2, %p172_p1 }
   0xd   :  { %157 = vmatpush3.bf16.msra.mxu0 %v156_v12  ;;  %p175_p4 = pnand %p174_p3, %p168_p0 }
   0xe   :  { %158 = vmatprep.subr.bf16.mxu0 %v192_v4 }
  0x11   :  { %160 = vmatpush3.bf16.msra.mxu0 %v159_v15 }
  0x81   :  { %v17_v18 = vpop.permute.xlu0 %16 }
  0x82   :  { %vm18_vm2 = vcmp.eq.s32.totalorder %v17_v18, %v13_v17 }
  0x83   :  { %v119_v19 = vsel %vm18_vm2, 1.0, %v194_v9 }
  0x84   :  { %147 = vmatmul.mubr.msk.f32.vlgmr.msra.gmra.mrb[0].mxu0 %vm29_vm1, %v119_v19 }
 0x157   :  { %v99_v20 = vpop.f32.mrb[0].mxu0 }
 0x158   :  { %104 = vst.msk [vmem:[#allocation2] sm:$0xff] %vm103_vm3, %v99_v20  ;;  %v148_v21 = vpop.f32.mrb[1].mxu0 }
 0x159   :  { %178 = shalt.err (!%p175_p4)
}
 0x15a   :  { %s179_s30 = scalar_lea.hbm %s252_s2, 128 }
 0x15b   :  { %p180_p5 = scmp.ne.s32.totalorder %s252_s2, %s179_s30  ;;  %p183_p6 = scmp.lt.u32.totalorder %s179_s30, %s252_s2 }
 0x15d   :  { %p185_p7 = pnand %p183_p6, %p180_p5 }
 0x15f   :  { %188 = shalt.err (!%p185_p7)
}
 0x160   :  { %114 = dma.vmem_to_hbm [thread:$0]  %s112_s27, 128, %s252_s2, [#allocation3]  }
 0x161   :  { %189 = dma.done.wait [#allocation3], 128  }
 0x162   :  { %190 = vsyncadd [#allocation3], 4294967168 }
 0x163   :  { %118 = vsyncpa [#allocation3], 1 }

</bundles_post_ra>
